<compile_context>
chip_gen: v5e
topology: v5e:2x2
jax: 0.10.0
libtpu: 0.0.40
codegen_flags: <defaults>
</compile_context>

<pallas_src>
import functools
import math

import jax
import jax.numpy as jnp
from jax import lax
from jax.experimental import pallas as pl
from jax.experimental.pallas import tpu as pltpu

_SQRT2 = math.sqrt(2.0)
_BIG = 1e30  # "minus infinity" surrogate for padded columns (exp(-_BIG) == 0 in f32/bf16)


def _gaussian_kernel(lhs_ref, rhs_ref, adj_ref, *, diag: bool, norm: bool,
                     row_tile: int, exp_dtype):
    # lhs block: (Bblk, F+2, TI), rhs block: (Bblk, F+2, N).
    # Squared-norm terms are folded into the operands, so the MXU emits z directly:
    #   z[b, i, j] = <es_i, es_j> - h_i - h_j = -sqdist[b, i, j] * sigma^2
    z = lax.dot_general(
        lhs_ref[...], rhs_ref[...],
        dimension_numbers=(((1,), (1,)), ((0,), (0,))),
        preferred_element_type=jnp.float32,
    )  # (Bblk, TI, N), f32

    # bf16 exp fast path on v6e/v7x (EUP throughput ~2x); f32 elsewhere.
    adj = jnp.exp(z.astype(exp_dtype))

    if not diag:
        bblk, ti, n = adj.shape
        row0 = pl.program_id(1) * row_tile
        cols = lax.broadcasted_iota(jnp.int32, (bblk, ti, n), 2)
        rows = row0 + lax.broadcasted_iota(jnp.int32, (bblk, ti, 1), 1)
        adj = jnp.where(cols == rows, jnp.zeros((), adj.dtype), adj)

    if norm:
        # Full rows are resident in this block, so the row sum is exact (one pass).
        # Keep the sum + reciprocal in f32 even on the bf16 fast path.
        deg = jnp.sum(adj, axis=-1, keepdims=True, dtype=jnp.float32)
        inv = pl.reciprocal(deg, approx=False)
        adj = adj * inv.astype(adj.dtype)

    adj_ref[...] = adj.astype(adj_ref.dtype)


def _device_params():
    """Generation-aware tiling / VMEM / fast-exp policy (conservative when unknown)."""
    kind = ""
    try:
        kind = jax.devices()[0].device_kind.lower()
    except Exception:
        pass
    is_v7 = ("v7" in kind) or ("7x" in kind)
    is_v6 = "v6" in kind
    is_v5 = "v5" in kind
    big_vmem = (("v4" in kind) or is_v5 or is_v6) and not is_v7   # 128 MiB VMEM parts
    if big_vmem:
        slab_target, ti_cap, vmem_limit = 6 * 1024 * 1024, 2048, 64 * 1024 * 1024
    else:
        # v7x (64 MiB physical VMEM) or unknown: conservative sizing.
        slab_target, ti_cap, vmem_limit = 2 * 1024 * 1024, 512, 32 * 1024 * 1024
    return dict(
        fast_exp=(is_v6 or is_v7),          # bf16 EUP only pays off on v6e / v7x
        slab_target_bytes=slab_target,
        ti_cap=ti_cap,
        vmem_limit_bytes=vmem_limit,
    )


def _choose_tiles(B: int, Np: int, slab_target_bytes: int, ti_cap: int):
    """Pick (batch_block, row_tile) for the (possibly padded) node count Np."""
    if Np % 128 == 0:
        max_rows = max(128, (slab_target_bytes // (4 * Np)) // 128 * 128)
        ti = min(Np, max_rows, ti_cap)
        while Np % ti != 0:
            ti -= 128
    else:
        # Small ragged Np (<=128): a single row band covers all rows
        # (block dim == full dim is legal).
        ti = Np
    # Consolidate the whole batch into one grid step only when truly tiny, so the
    # grid does not collapse to (1, 1) on dual-TensorCore parts for real workloads.
    tiny = (ti == Np) and (B * Np * Np * 4 <= 256 * 1024)
    bblk = B if tiny else 1
    if B % bblk != 0:
        bblk = 1
    return bblk, ti


def gaussian_adjacency(emb, sigma, *, diag: bool = True, norm: bool = False,
                       out_dtype=jnp.float32, fast_exp=None):
    """emb: (B, F, N) float32, sigma: (1,) float32 -> adj: (B, N, N) out_dtype."""
    B, F, N = emb.shape
    params = _device_params()
    if fast_exp is None:
        fast_exp = params["fast_exp"]
    exp_dtype = jnp.bfloat16 if fast_exp else jnp.float32

    # Ragged-N fix: pad large non-lane-multiple N up to a multiple of 128 so row-band
    # tiling + lane-dense stores still apply. Padded columns are knocked out through
    # h_pad = +BIG (exp underflows to 0), keeping norm row sums exact; padded rows/cols
    # are sliced off at the end.
    if N % 128 != 0 and N > 128:
        Np = ((N + 127) // 128) * 128
        emb_p = jnp.pad(emb, ((0, 0), (0, 0), (0, Np - N)))
    else:
        Np = N
        emb_p = emb

    # Fold sigma and the squared-norm terms into the matmul operands (O(B*F*N) work):
    #   es = sqrt(2)*sigma*e,  h = 0.5*||es||^2 = sigma^2*||e||^2
    #   lhs = [es; -h; 1], rhs = [es; 1; -h]  =>  lhs^T @ rhs = -sqdist*sigma^2
    sig = sigma.reshape(()).astype(jnp.float32)
    es = emb_p.astype(jnp.float32) * (sig * jnp.float32(_SQRT2))      # (B, F, Np)
    h = 0.5 * jnp.sum(es * es, axis=1, keepdims=True)                 # (B, 1, Np)
    if Np != N:
        pad_col = (jnp.arange(Np) >= N)[None, None, :]
        h = jnp.where(pad_col, jnp.float32(_BIG), h)
    ones = jnp.ones_like(h)
    lhs = jnp.concatenate([es, -h, ones], axis=1)                     # (B, F+2, Np)
    rhs = jnp.concatenate([es, ones, -h], axis=1)                     # (B, F+2, Np)
    F2 = F + 2

    bblk, ti = _choose_tiles(B, Np, params["slab_target_bytes"], params["ti_cap"])
    grid = (B // bblk, Np // ti)
    kernel = functools.partial(_gaussian_kernel, diag=diag, norm=norm,
                               row_tile=ti, exp_dtype=exp_dtype)

    adj = pl.pallas_call(
        kernel,
        out_shape=jax.ShapeDtypeStruct((B, Np, Np), out_dtype),
        grid_spec=pltpu.PrefetchScalarGridSpec(
            num_scalar_prefetch=0,
            grid=grid,
            in_specs=[
                # Row band's own (augmented) columns: (Bblk, F+2, TI).
                pl.BlockSpec((bblk, F2, ti), lambda b, i: (b, 0, i)),
                # Full (augmented) node set for the "j" side: (Bblk, F+2, Np).
                pl.BlockSpec((bblk, F2, Np), lambda b, i: (b, 0, 0)),
            ],
            # Lane-dense output slab (last dim = Np); one row band per grid step.
            out_specs=pl.BlockSpec((bblk, ti, Np), lambda b, i: (b, i, 0)),
        ),
        compiler_params=pltpu.CompilerParams(
            # Each output tile is independent -> both axes can shard across 2 TCs.
            dimension_semantics=("parallel", "parallel"),
            vmem_limit_bytes=params["vmem_limit_bytes"],
        ),
    )(lhs, rhs)

    if Np != N:
        adj = adj[:, :N, :N]
    return adj


def gaussian_adjacency_ref(emb, sigma, *, diag: bool = True, norm: bool = False):
    """Pure-JAX reference of the PyTorch forward."""
    sqnorm = jnp.sum(emb * emb, axis=1)                      # (B, N)
    gram = jnp.einsum("bfi,bfj->bij", emb, emb)              # (B, N, N)
    sqdist = sqnorm[:, :, None] + sqnorm[:, None, :] - 2.0 * gram
    adj = jnp.exp(-sqdist * (sigma[0] ** 2))
    if not diag:
        n = adj.shape[1]
        adj = adj * (1.0 - jnp.eye(n, dtype=adj.dtype))[None]
    if norm:
        adj = adj / jnp.sum(adj, axis=-1, keepdims=True)
    return adj


if __name__ == "__main__":
    key = jax.random.PRNGKey(0)
    k_emb, k_sigma, k_emb2, k_emb3 = jax.random.split(key, 4)

    params = _device_params()
    f32_tol = dict(atol=1e-5, rtol=1e-4)
    auto_tol = dict(atol=3e-2, rtol=8e-2) if params["fast_exp"] else f32_tol

    # Small shapes consistent with the module: batch=2, fmap=4, nb_node=16.
    B, F, N = 2, 4, 16
    emb = jax.random.normal(k_emb, (B, F, N), dtype=jnp.float32)
    # Deterministic parameter init mirroring Parameter(torch.rand(1)*0.02 + 0.99).
    sigma = jax.random.uniform(k_sigma, (1,), dtype=jnp.float32) * 0.02 + 0.99

    # 1) Default module configuration (diag=True, norm=False), exact f32 path.
    adj = jax.block_until_ready(gaussian_adjacency(emb, sigma, diag=True, norm=False,
                                                   fast_exp=False))
    ref = gaussian_adjacency_ref(emb, sigma, diag=True, norm=False)
    assert jnp.allclose(adj, ref, **f32_tol), "mismatch vs reference (f32)"

    # 2) Diag-deletion + row-normalization, f32 path.
    adj = jax.block_until_ready(gaussian_adjacency(emb, sigma, diag=False, norm=True,
                                                   fast_exp=False))
    ref_dn = gaussian_adjacency_ref(emb, sigma, diag=False, norm=True)
    assert jnp.allclose(adj, ref_dn, **f32_tol), "mismatch vs reference (diag/norm f32)"

    # 3) Auto (generation-gated) fast-exp path on the same case.
    adj = jax.block_until_ready(gaussian_adjacency(emb, sigma, diag=False, norm=True))
    assert jnp.allclose(adj, ref_dn, **auto_tol), "mismatch vs reference (auto path)"

    # 4) bf16 output dtype (halves HBM writeback for large N).
    adj = jax.block_until_ready(gaussian_adjacency(emb, sigma, diag=True, norm=False,
                                                   out_dtype=jnp.bfloat16, fast_exp=False))
    assert jnp.allclose(adj.astype(jnp.float32), ref, atol=1e-2, rtol=2e-2), \
        "mismatch vs reference (bf16 output)"

    # 5) Larger lane-dense shape exercising multi-band row tiling on every generation.
    B2, F2_, N2 = 2, 4, 2048
    emb2 = jax.random.normal(k_emb2, (B2, F2_, N2), dtype=jnp.float32)
    adj2 = jax.block_until_ready(gaussian_adjacency(emb2, sigma, diag=False, norm=True))
    ref2 = gaussian_adjacency_ref(emb2, sigma, diag=False, norm=True)
    assert jnp.allclose(adj2, ref2, **auto_tol), "mismatch vs reference (tiled)"

    # 6) Ragged N (internally padded to a multiple of 128, then sliced back).
    B3, F3, N3 = 2, 4, 200
    emb3 = jax.random.normal(k_emb3, (B3, F3, N3), dtype=jnp.float32)
    adj3 = jax.block_until_ready(gaussian_adjacency(emb3, sigma, diag=False, norm=True))
    ref3 = gaussian_adjacency_ref(emb3, sigma, diag=False, norm=True)
    assert adj3.shape == (B3, N3, N3)
    assert jnp.allclose(adj3, ref3, **auto_tol), "mismatch vs reference (ragged N)"

    print("KERNEL_OK")
</pallas_src>

<mosaic_0001>
module attributes {stable_mosaic.version = 11 : i64} {
  func.func @_gaussian_kernel(%arg0: i32, %arg1: i32, %arg2: memref<2x6x16xf32, #tpu.memory_space<vmem>>, %arg3: memref<2x6x16xf32, #tpu.memory_space<vmem>>, %arg4: memref<2x16x16xf32, #tpu.memory_space<vmem>>) attributes {dimension_semantics = [#tpu.dimension_semantics<parallel>, #tpu.dimension_semantics<parallel>], iteration_bounds = array<i64: 1, 1>, scalar_prefetch = 0 : i64, scratch_operands = 0 : i64, tpu.core_type = #tpu.core_type<tc>, window_params = [{transform_indices = @transform_0, window_bounds = array<i64: 2, 6, 16>}, {transform_indices = @transform_1, window_bounds = array<i64: 2, 6, 16>}, {transform_indices = @transform_2, window_bounds = array<i64: 2, 16, 16>}]} {
    %c0 = arith.constant 0 : index
    %c0_0 = arith.constant 0 : index
    %c0_1 = arith.constant 0 : index
    %0 = vector.load %arg2[%c0, %c0_0, %c0_1] : memref<2x6x16xf32, #tpu.memory_space<vmem>>, vector<2x6x16xf32>
    %c0_2 = arith.constant 0 : index
    %c0_3 = arith.constant 0 : index
    %c0_4 = arith.constant 0 : index
    %1 = vector.load %arg3[%c0_2, %c0_3, %c0_4] : memref<2x6x16xf32, #tpu.memory_space<vmem>>, vector<2x6x16xf32>
    %cst = arith.constant dense<0.000000e+00> : vector<2x16x16xf32>
    %2 = tpu.matmul %0, %1, %cst {dimension_numbers = #tpu.dot_dimension_numbers<[1], [1], [2], [2], [0, 0, 0, 2, 1, 2], [0], [0]>} : vector<2x6x16xf32>, vector<2x6x16xf32>, vector<2x16x16xf32> -> vector<2x16x16xf32>
    %3 = math.exp %2 : vector<2x16x16xf32>
    %c0_5 = arith.constant 0 : index
    %c0_6 = arith.constant 0 : index
    %c0_7 = arith.constant 0 : index
    %4 = vector.load %arg4[%c0_5, %c0_6, %c0_7] : memref<2x16x16xf32, #tpu.memory_space<vmem>>, vector<2x16x16xf32>
    tpu.vector_store %arg4[%c0_5, %c0_6, %c0_7], %3 {strides = array<i32>} : memref<2x16x16xf32, #tpu.memory_space<vmem>>, vector<2x16x16xf32>,
    return
  }
  func.func @transform_0(%arg0: i32, %arg1: i32) -> (i32, i32, i32) {
    %c0_i32 = arith.constant 0 : i32
    %c0_i32_0 = arith.constant 0 : i32
    return %arg0, %c0_i32, %arg1 : i32, i32, i32
  }
  func.func @transform_1(%arg0: i32, %arg1: i32) -> (i32, i32, i32) {
    %c0_i32 = arith.constant 0 : i32
    %c0_i32_0 = arith.constant 0 : i32
    %c0_i32_1 = arith.constant 0 : i32
    return %arg0, %c0_i32, %c0_i32_0 : i32, i32, i32
  }
  func.func @transform_2(%arg0: i32, %arg1: i32) -> (i32, i32, i32) {
    %c0_i32 = arith.constant 0 : i32
    %c0_i32_0 = arith.constant 0 : i32
    return %arg0, %arg1, %c0_i32 : i32, i32, i32
  }
}

</mosaic_0001>

<bundles_post_ra>
// kernel: tpu_custom_call.1
= control target key start
LH: loop header
LB: loop body
LE: loop exit
PB: predicated region body
PF: predicated region fallthrough
CT: control target
= control target key end

     0   :  { %vm55_vm0 = vcmask 1045504   ;;  %s260_s0 = inlined_call_operand.vmem [shape: f32[2,6,16], index: 0, kind: input, shape index: {}]   ;;  %s261_s1 = inlined_call_operand.vmem [shape: f32[2,6,16], index: 1, kind: input, shape index: {}]   ;;  %s262_s2 = inlined_call_operand.hbm [shape: f32[2,16,16], index: 2, kind: output, shape index: {}]  }
   0x1   :  { %v12_v0 = vld [vmem:[%s260_s0] sm:$0x3f] }
   0x2   :  { %v14_v1 = vld [vmem:[%s261_s1] sm:$0x3f]  ;;  %16 = vxpose.xlu0.b32.start.end [1/1] (short) (narrow) %v12_v0, 16 }
   0x3   :  { %7 = vsyncpa [#allocation3], 0  ;;  %177 = vmatpush.msk.msra.mxu0 %vm55_vm0, %v14_v1  ;;  %183 = vmatpush.msk.msra.mxu2 %vm55_vm0, %v14_v1  ;;  %v13_v2 = vld [vmem:[%s260_s0 + $0x8] sm:$0x3f]  ;;  %vm48_vm1 = vcmask 48128   ;;  %vm154_vm2 = vcmask 130048  }
   0x4   :  { %v15_v3 = vld [vmem:[%s261_s1 + $0x8] sm:$0x3f]  ;;  %s223_s0 = smov [#allocation2]   ;;  %s165_s19 = sshll.u32 %s262_s2, 4  ;;  %s166_s19 = int_to_ptr.hbm [resolvable:$true] %s165_s19 }
   0x5   :  { %180 = vmatpush.msk.msra.mxu1 %vm55_vm0, %v15_v3  ;;  %184 = vmatpush.msk.msra.mxu3 %vm55_vm0, %v15_v3  ;;  %s163_s1 = sshll.u32 %s223_s0, 4  ;;  %s224_s20 = smov 128   ;;  %s164_s1 = int_to_ptr.vmem [resolvable:$true] %s163_s1 }
   0x6   :  { %s225_s21 = smov 8  }
  0x12   :  { %82 = vxpose.xlu0.b32.start.end [1/1] (short) (narrow) %v13_v2, 16 }
  0xa6   :  { %v32_v4 = vpop.trf.xlu0 }
  0xa7   :  { %178 = vmatmul.msk.f32.vlgmr.msra.gmra.mxu0 %vm48_vm1, %v32_v4 }
  0xae   :  { %v33_v5 = vpop.trf.xlu0 }
  0xaf   :  { %179 = vmatmul.msk.f32.vlgmr.msra.gmra.mxu2 %vm48_vm1, %v33_v5 }
  0xb6   :  { %v98_v6 = vpop.trf.xlu0 }
  0xb7   :  { %181 = vmatmul.msk.f32.vlgmr.msra.gmra.mxu1 %vm48_vm1, %v98_v6 }
  0xbe   :  { %v99_v7 = vpop.trf.xlu0 }
  0xbf   :  { %182 = vmatmul.msk.f32.vlgmr.msra.gmra.mxu3 %vm48_vm1, %v99_v7 }
 0x124   :  { %v76_v8 = vpop.f32.mrf.mxu0 }
 0x125   :  { %v146_v9 = vmul.f32 1.442695, %v76_v8 }
 0x127   :  { %189 = vpow2.f32 %v146_v9 }
 0x12d   :  { %v190_v10 = vpop.eup %189 }
 0x12e   :  { %155 = vst.msk [vmem:[#allocation2] sm:$0xff] %vm154_vm2, %v190_v10 }
 0x132   :  { %v79_v11 = vpop.f32.mrf.mxu2 }
 0x133   :  { %v148_v12 = vmul.f32 1.442695, %v79_v11 }
 0x134   :  { %v140_v13 = vpop.f32.mrf.mxu1 }
 0x135   :  { %191 = vpow2.f32 %v148_v12  ;;  %v150_v14 = vmul.f32 1.442695, %v140_v13 }
 0x137   :  { %193 = vpow2.f32 %v150_v14 }
 0x13b   :  { %v192_v15 = vpop.eup %191 }
 0x13c   :  { %156 = vst.msk [vmem:[#allocation2 + $0x8] sm:$0xff] %vm154_vm2, %v192_v15 }
 0x13d   :  { %v194_v16 = vpop.eup %193 }
 0x13e   :  { %157 = vst.msk [vmem:[#allocation2 + $0x10] sm:$0xff] %vm154_vm2, %v194_v16 }
 0x142   :  { %v143_v17 = vpop.f32.mrf.mxu3 }
 0x143   :  { %v152_v18 = vmul.f32 1.442695, %v143_v17 }
 0x145   :  { %195 = vpow2.f32 %v152_v18 }
 0x14b   :  { %v196_v19 = vpop.eup %195 }
 0x14c   :  { %158 = vst.msk [vmem:[#allocation2 + $0x18] sm:$0xff] %vm154_vm2, %v196_v19 }
 0x14d   :  { %171 = dma.vmem_to_hbm [thread:$0]  %s164_s1, 512, %s166_s19, [#allocation3], %s224_s20, %s224_s20, %s225_s21  }
 0x14e   :  { %221 = dma.done.wait [#allocation3], 512  }
 0x14f   :  { %222 = vsyncadd [#allocation3], 4294966784 }
 0x150   :  { %176 = vsyncpa [#allocation3], 1 }

</bundles_post_ra>
